<compile_context>
chip_gen: v7x
topology: tpu7x:2x2x1
jax: 0.10.0
libtpu: 0.0.40
codegen_flags: <defaults>
</compile_context>

<pallas_src>
import math
import numpy as np

import jax
import jax.numpy as jnp
from jax import lax
from jax.experimental import pallas as pl
from jax.experimental.pallas import tpu as pltpu


DEFAULT_BBOX_SIZE = 256


def scale_box(box, scale):
    # Scale a box about its center (scale == 1 -> identity), matching the helper
    # the PyTorch module relies on.
    x1, y1, x2, y2 = box
    cx, cy = (x1 + x2) / 2.0, (y1 + y2) / 2.0
    w, h = (x2 - x1) * scale, (y2 - y1) * scale
    return [cx - w / 2.0, cy - h / 2.0, cx + w / 2.0, cy + h / 2.0]


def _round_up(v, m):
    return ((v + m - 1) // m) * m


def _default_crop_bounds(size, scale, empty_scale):
    y1, y2, x1, x2 = [c * size / DEFAULT_BBOX_SIZE for c in (35, 223, 32, 220)]
    x1, y1, x2, y2 = scale_box([x1, y1, x2, y2], scale / empty_scale)
    ys, ye = max(0, int(y1)), min(int(y2), size)
    xs, xe = max(0, int(x1)), min(int(x2), size)
    return ys, ye, xs, xe


def _bilinear_weight_matrix(out_size, in_size, offset, full_size, dtype=np.float32):
    """Rows: output pixel; cols: pixel of a [0, full_size) window (crop start
    folded in via `offset`).  Matches F.interpolate(mode='bilinear',
    align_corners=False): src = max(0, (i + 0.5) * in/out - 0.5)."""
    W = np.zeros((out_size, full_size), dtype=dtype)
    scale = in_size / out_size
    for i in range(out_size):
        src = max((i + 0.5) * scale - 0.5, 0.0)
        i0 = min(int(math.floor(src)), in_size - 1)
        i1 = min(i0 + 1, in_size - 1)
        frac = src - i0
        W[i, offset + i0] += (1.0 - frac)
        W[i, offset + i1] += frac
    return W


def _pick_bnc_and_vmem(nc, He, We, T, in_itemsize, out_itemsize, c_itemsize):
    """Slab batch Bnc from the per-generation VMEM budget, keeping >= 4 grid
    steps per TensorCore so both v7x cores get pipelined work."""
    try:
        vmem_cap = int(pltpu.get_tpu_info().vmem_capacity_bytes)  # 64 MiB v7x, 128 MiB v5e/v6e
    except Exception:
        vmem_cap = 64 * 1024 * 1024
    # 60 MiB hard cap stays legal even if a 64-MiB/TC part reports a per-chip
    # number; v5e/v6e never need more for this kernel anyway.
    vmem_limit = min((vmem_cap * 3) // 4, 60 * 1024 * 1024)
    budget = (vmem_limit * 3) // 4                       # headroom for compiler scratch

    fixed = 2 * (T * He + We * T) * c_itemsize           # weights (double-buffered, fetched once)
    fixed += He * We * c_itemsize                        # per-slab input cast to compute dtype
    fixed += He * T * (4 + c_itemsize)                   # stage-1 f32 acc + its compute-dtype cast
    fixed += T * T * 4                                   # stage-2 f32 acc
    per_slab = 2 * He * We * in_itemsize + 2 * T * T * out_itemsize  # dbl-buffered in/out blocks

    bnc_cap = max(1, (budget - fixed) // per_slab)
    bnc_cap = int(min(bnc_cap, 64, max(1, nc // 8)))     # >= 8 grid steps total (4 per v7x core)

    # Prefer an exact divisor of NC (no ragged tail) unless that would more than
    # halve the slab batch; otherwise use a non-divisor Bnc with a ragged last block.
    best_div = max(d for d in range(1, bnc_cap + 1) if nc % d == 0)
    bnc = best_div if 2 * best_div >= bnc_cap else bnc_cap
    return int(min(bnc, nc)), int(vmem_limit)


def _make_kernel(Bnc, compute_dtype, out_dtype):
    unroll = int(min(Bnc, 4))

    def kernel(x_ref, wy_ref, wxt_ref, o_ref):
        wy = wy_ref[...]       # (T, He)  compute dtype
        wxt = wxt_ref[...]     # (We, T)  compute dtype

        def body(i, carry):
            xi = x_ref[i].astype(compute_dtype)                        # (He, We)
            t = jnp.dot(xi, wxt, preferred_element_type=jnp.float32)   # (He, T) f32 acc
            o_ref[i] = jnp.dot(wy, t.astype(compute_dtype),
                               preferred_element_type=jnp.float32
                               ).astype(out_dtype)                     # (T, T)
            return carry

        lax.fori_loop(0, Bnc, body, None, unroll=unroll)

    return kernel


def face_cropper_forward(x, target_size, scale=1, empty_scale=1,
                         compute_dtype=jnp.bfloat16):
    """Equivalent of FaceCropper(target_size, scale, empty_scale)(x, crop=None)."""
    N, C, H, W = x.shape
    assert H == W, "FaceCropper expects square inputs"

    ys, ye, xs, xe = _default_crop_bounds(H, scale, empty_scale)
    crop_h, crop_w = ye - ys, xe - xs
    assert crop_h > 0 and crop_w > 0

    T = int(target_size)
    in_itemsize = jnp.dtype(x.dtype).itemsize
    out_itemsize = in_itemsize
    sub = max(8, 32 // in_itemsize)            # sublane tile for the input dtype
    He = min(_round_up(ye, sub), H)            # never read trailing rows past the crop
    We = min(_round_up(xe, 128), W)            # never read trailing lane-tiles past the crop

    compute_dtype = jnp.dtype(compute_dtype)
    c_itemsize = compute_dtype.itemsize

    wy_np = _bilinear_weight_matrix(T, crop_h, ys, He)                 # (T, He)
    wxt_np = np.ascontiguousarray(_bilinear_weight_matrix(T, crop_w, xs, We).T)  # (We, T)
    wy = jnp.asarray(wy_np, dtype=compute_dtype)
    wxt = jnp.asarray(wxt_np, dtype=compute_dtype)

    NC = N * C
    xf = x.reshape(NC, H, W)                   # free leading-dim merge

    Bnc, vmem_limit = _pick_bnc_and_vmem(NC, He, We, T,
                                         in_itemsize, out_itemsize, c_itemsize)
    n_steps = pl.cdiv(NC, Bnc)                 # ragged last block allowed

    kernel = _make_kernel(Bnc, compute_dtype, x.dtype)

    cost = pl.CostEstimate(
        flops=2 * NC * (He * We * T + T * He * T),
        transcendentals=0,
        bytes_accessed=(NC * He * We * in_itemsize
                        + NC * T * T * out_itemsize
                        + (T * He + We * T) * c_itemsize),
    )

    out = pl.pallas_call(
        kernel,
        out_shape=jax.ShapeDtypeStruct((NC, T, T), x.dtype),
        grid_spec=pltpu.PrefetchScalarGridSpec(
            num_scalar_prefetch=0,
            grid=(n_steps,),
            in_specs=[
                pl.BlockSpec((Bnc, He, We), lambda b: (b, 0, 0)),
                pl.BlockSpec((T, He), lambda b: (0, 0)),   # constant index -> fetched once
                pl.BlockSpec((We, T), lambda b: (0, 0)),   # constant index -> fetched once
            ],
            out_specs=pl.BlockSpec((Bnc, T, T), lambda b: (b, 0, 0)),
        ),
        compiler_params=pltpu.CompilerParams(
            dimension_semantics=("parallel",),
            vmem_limit_bytes=vmem_limit,
        ),
        cost_estimate=cost,
    )(xf, wy, wxt)

    return out.reshape(N, C, T, T)             # free leading-dim split


def _reference(x, target_size, scale=1, empty_scale=1):
    """Pure-JAX f32 reference (crop folded into full-image interpolation matrices)."""
    _, _, H, W = x.shape
    ys, ye, xs, xe = _default_crop_bounds(H, scale, empty_scale)
    Wy = jnp.asarray(_bilinear_weight_matrix(target_size, ye - ys, ys, H))
    Wx = jnp.asarray(_bilinear_weight_matrix(target_size, xe - xs, xs, W))
    return jnp.einsum("th,nchw,sw->ncts", Wy, x, Wx)


if __name__ == "__main__":
    T = 16
    k0, k1 = jax.random.split(jax.random.PRNGKey(0))

    # 1) Default bf16 compute path, small NC (Bnc = 1 path).
    x1 = jax.random.normal(k0, (2, 4, 16, 16), dtype=jnp.float32)
    out1 = jax.block_until_ready(face_cropper_forward(x1, T))
    assert out1.shape == (2, 4, T, T)
    err1 = float(jnp.max(jnp.abs(out1 - _reference(x1, T))))
    assert err1 < 1e-1, f"bf16 path max abs err {err1}"

    # 2) Default bf16 compute path with slab batching (NC=32 -> Bnc=4, fori_loop).
    x2 = jax.random.normal(k1, (2, 16, 16, 16), dtype=jnp.float32)
    out2 = jax.block_until_ready(face_cropper_forward(x2, T))
    assert out2.shape == (2, 16, T, T)
    err2 = float(jnp.max(jnp.abs(out2 - _reference(x2, T))))
    assert err2 < 1e-1, f"bf16 batched path max abs err {err2}"

    # 3) Exact f32 compute path (validates the interpolation math tightly).
    out3 = jax.block_until_ready(
        face_cropper_forward(x1, T, compute_dtype=jnp.float32))
    err3 = float(jnp.max(jnp.abs(out3 - _reference(x1, T))))
    assert err3 < 1e-4, f"f32 path max abs err {err3}"

    print("KERNEL_OK")
</pallas_src>

<mosaic_0001>
module attributes {stable_mosaic.version = 11 : i64} {
  func.func @kernel(%arg0: i32, %arg1: memref<1x16x16xf32, #tpu.memory_space<vmem>>, %arg2: memref<16x16xbf16, #tpu.memory_space<vmem>>, %arg3: memref<16x16xbf16, #tpu.memory_space<vmem>>, %arg4: memref<1x16x16xf32, #tpu.memory_space<vmem>>) attributes {dimension_semantics = [#tpu.dimension_semantics<parallel>], iteration_bounds = array<i64: 8>, scalar_prefetch = 0 : i64, scratch_operands = 0 : i64, tpu.core_type = #tpu.core_type<tc>, window_params = [{transform_indices = @transform_0, window_bounds = array<i64: 1, 16, 16>}, {pipeline_mode = #tpu.pipeline_mode<synchronous>, transform_indices = @transform_1, window_bounds = array<i64: 16, 16>}, {pipeline_mode = #tpu.pipeline_mode<synchronous>, transform_indices = @transform_2, window_bounds = array<i64: 16, 16>}, {transform_indices = @transform_3, window_bounds = array<i64: 1, 16, 16>}]} {
    %c0 = arith.constant 0 : index
    %c0_0 = arith.constant 0 : index
    %0 = vector.load %arg2[%c0, %c0_0] : memref<16x16xbf16, #tpu.memory_space<vmem>>, vector<16x16xbf16>
    %c0_1 = arith.constant 0 : index
    %c0_2 = arith.constant 0 : index
    %1 = vector.load %arg3[%c0_1, %c0_2] : memref<16x16xbf16, #tpu.memory_space<vmem>>, vector<16x16xbf16>
    %c0_i32 = arith.constant 0 : i32
    %2 = arith.index_cast %c0_i32 : i32 to index
    %c0_3 = arith.constant 0 : index
    %c0_4 = arith.constant 0 : index
    %3 = vector.load %arg1[%2, %c0_3, %c0_4] : memref<1x16x16xf32, #tpu.memory_space<vmem>>, vector<1x16x16xf32>
    %4 = vector.shape_cast %3 : vector<1x16x16xf32> to vector<16x16xf32>
    %5 = arith.truncf %4 : vector<16x16xf32> to vector<16x16xbf16>
    %cst = arith.constant dense<0.000000e+00> : vector<16x16xf32>
    %6 = tpu.matmul %5, %1, %cst {dimension_numbers = #tpu.dot_dimension_numbers<[1], [0], [0], [1], [0, 0, 1, 1], [], []>} : vector<16x16xbf16>, vector<16x16xbf16>, vector<16x16xf32> -> vector<16x16xf32>
    %7 = arith.truncf %6 : vector<16x16xf32> to vector<16x16xbf16>
    %cst_5 = arith.constant dense<0.000000e+00> : vector<16x16xf32>
    %8 = tpu.matmul %0, %7, %cst_5 {dimension_numbers = #tpu.dot_dimension_numbers<[1], [0], [0], [1], [0, 0, 1, 1], [], []>} : vector<16x16xbf16>, vector<16x16xbf16>, vector<16x16xf32> -> vector<16x16xf32>
    %9 = arith.index_cast %c0_i32 : i32 to index
    %c0_6 = arith.constant 0 : index
    %c0_7 = arith.constant 0 : index
    %10 = vector.load %arg4[%9, %c0_6, %c0_7] : memref<1x16x16xf32, #tpu.memory_space<vmem>>, vector<1x16x16xf32>
    %11 = vector.shape_cast %10 : vector<1x16x16xf32> to vector<16x16xf32>
    %12 = vector.shape_cast %8 : vector<16x16xf32> to vector<1x16x16xf32>
    tpu.vector_store %arg4[%9, %c0_6, %c0_7], %12 {strides = array<i32>} : memref<1x16x16xf32, #tpu.memory_space<vmem>>, vector<1x16x16xf32>,
    %c1_i32 = arith.constant 1 : i32
    return
  }
  func.func @transform_0(%arg0: i32) -> (i32, i32, i32) {
    %c0_i32 = arith.constant 0 : i32
    %c0_i32_0 = arith.constant 0 : i32
    %c0_i32_1 = arith.constant 0 : i32
    return %arg0, %c0_i32, %c0_i32_0 : i32, i32, i32
  }
  func.func @transform_1(%arg0: i32) -> (i32, i32) {
    %c0_i32 = arith.constant 0 : i32
    %c0_i32_0 = arith.constant 0 : i32
    %c0_i32_1 = arith.constant 0 : i32
    return %c0_i32, %c0_i32_0 : i32, i32
  }
  func.func @transform_2(%arg0: i32) -> (i32, i32) {
    %c0_i32 = arith.constant 0 : i32
    %c0_i32_0 = arith.constant 0 : i32
    %c0_i32_1 = arith.constant 0 : i32
    return %c0_i32, %c0_i32_0 : i32, i32
  }
  func.func @transform_3(%arg0: i32) -> (i32, i32, i32) {
    %c0_i32 = arith.constant 0 : i32
    %c0_i32_0 = arith.constant 0 : i32
    %c0_i32_1 = arith.constant 0 : i32
    return %arg0, %c0_i32, %c0_i32_0 : i32, i32, i32
  }
}

</mosaic_0001>

<bundles_post_ra>
// kernel: tpu_custom_call.1
= control target key start
LH: loop header
LB: loop body
LE: loop exit
PB: predicated region body
PF: predicated region fallthrough
CT: control target
= control target key end

     0   :  { %8 = vsyncpa [#allocation3], 0  ;;  %s971_s0 = inlined_call_operand.hbm [shape: f32[8,16,16], index: 0, kind: input, shape index: {}]   ;;  %s972_s1 = inlined_call_operand.hbm [shape: bf16[16,16], index: 1, kind: input, shape index: {}]   ;;  %s973_s2 = inlined_call_operand.hbm [shape: bf16[16,16], index: 2, kind: input, shape index: {}]   ;;  %s974_s3 = inlined_call_operand.hbm [shape: f32[8,16,16], index: 3, kind: output, shape index: {}]  }
   0x1   :  { %10 = vsyncpa [#allocation3 + $0x1], 0 }
   0x2   :  { %11 = vsyncpa [#allocation6], 0 }
   0x3   :  { %12 = vsyncpa [#allocation4], 0 }
   0x4   :  { %14 = vsyncpa [#allocation4 + $0x1], 0  ;;  %s742_s12 = smov 0   ;;  %s744_s13 = smov 0  }
   0x5   :  { %s746_s14 = smov 0   ;;  %s748_s15 = smov 0  }
   0x6 LB: > { %s763_s16 = sadd.s32 4294967295, %s708_s15   ;;  %s435_s17 = sadd.s32 4294967294, %s708_s15   ;;  %s708_s15 = sphi %s748_s15, %s993_s15   ;;  %s704_s14 = sphi %s746_s14, %s992_s14   ;;  %s700_s13 = sphi %s744_s13, %s991_s13   ;;  %s696_s12 = sphi %s742_s12, %s990_s12  }
   0x7   : > { %p40_p0 = scmp.ne.s32.totalorder %s700_s13, %s696_s12  ;;  %p975_p1 = scmp.eq.s32.totalorder %s763_s16, 0 }
   0x8   : > { %p112_p3 = scmp.eq.s32.totalorder %s435_s17, 7  ;;  %p436_p5 = scmp.ge.s32.totalorder %s708_s15, 1 }
   0x9   : > { %p772_p4 = por %p975_p1, %p40_p0  ;;  %p119_p7 = scmp.lt.s32.totalorder %s708_s15, 9 }
   0xa   : > { %p777_p6 = por %p112_p3, %p40_p0  ;;  %s710_s21 = smov [#allocation5]  }
   0xb   : > { %s978_s18 = scalar_select %p772_p4, 1, 0 }
   0xc   : > { %s979_s19 = scalar_select %p777_p6, 1, 0 }
   0xd   : > { %p782_p8 = pnand %p436_p5, %p119_p7  ;;  %s131_s22 = sshll.u32 %s710_s21, 4  ;;  %s132_s22 = int_to_ptr.vmem [resolvable:$true] %s131_s22 }
   0xe   : > { %s711_s24 = smov [#allocation7]   ;;  %s552_s28 = scalar_lea.hbm %s972_s1, 128 }
   0xf   : > { %s980_s20 = scalar_select %p782_p8, 1, 0 }
  0x10   : > { %p487_p9 = pneg %p782_p8  ;;  %s144_s25 = sshll.u32 %s711_s24, 4  ;;  %s794_s25 = int_to_ptr.vmem [resolvable:$true] %s144_s25 }
  0x11   : > { %p553_p11 = scmp.ne.s32.totalorder %s972_s1, %s552_s28  ;;  %p559_p3 = scmp.lt.u32.totalorder %s552_s28, %s972_s1 }
  0x12   : > { %p790_p10 = pnand %p487_p9, %p975_p1 }
  0x14   : > { %p554_p12 = pneg %p790_p10 }
  0x16   : > { %p555_p13 = pnand %p554_p12, %p553_p11 }
  0x18   : > { %p556_p0 = pneg %p555_p13 }
  0x1a   : > { %p561_p5 = pnand %p559_p3, %p556_p0 }
  0x1c   : > { %564 = shalt.err (!%p561_p5)
}
  0x1d   : > { %s565_s6 = scalar_lea.vmem %s132_s22, 128  ;;  %p573_p2 = scmp.lt.s32.totalorder %s132_s22, %s132_s22 }
  0x1e   : > { %p566_p7 = scmp.ne.s32.totalorder %s132_s22, %s565_s6  ;;  %p574_p6 = scmp.lt.s32.totalorder %s565_s6, %s565_s6 }
  0x20   : > { %p568_p9 = pnand %p566_p7, %p554_p12  ;;  %p575_p4 = por %p574_p6, %p573_p2 }
  0x22   : > { %p569_p1 = pneg %p568_p9 }
  0x24   : > { %p576_p8 = pnand %p575_p4, %p569_p1 }
  0x26   : > { %579 = shalt.err (!%p576_p8)
}
  0x27   : > { %s712_s7 = smov 64   ;;  %s713_s8 = smov 4  }
  0x28   : > { %490 = dma.hbm_to_vmem [thread:$0]  (!%p790_p10), %s972_s1, 128, %s132_s22, [#allocation6], %s712_s7, %s712_s7, %s713_s8  }
  0x29   : > { %s580_s21 = scalar_lea.hbm %s973_s2, 128 }
  0x2a   : > { %p581_p11 = scmp.ne.s32.totalorder %s973_s2, %s580_s21  ;;  %p587_p4 = scmp.lt.u32.totalorder %s580_s21, %s973_s2 }
  0x2c   : > { %p583_p1 = pnand %p581_p11, %p554_p12 }
  0x2e   : > { %p584_p2 = pneg %p583_p1 }
  0x30   : > { %p589_p6 = pnand %p587_p4, %p584_p2 }
  0x32   : > { %592 = shalt.err (!%p589_p6)
}
  0x33   : > { %s593_s22 = scalar_lea.vmem %s794_s25, 128  ;;  %p601_p3 = scmp.lt.s32.totalorder %s794_s25, %s794_s25 }
  0x34   : > { %p594_p8 = scmp.ne.s32.totalorder %s794_s25, %s593_s22  ;;  %p602_p5 = scmp.lt.s32.totalorder %s593_s22, %s593_s22 }
  0x36   : > { %p596_p13 = pnand %p594_p8, %p554_p12  ;;  %p603_p7 = por %p602_p5, %p601_p3 }
  0x38   : > { %p597_p0 = pneg %p596_p13 }
  0x3a   : > { %p604_p9 = pnand %p603_p7, %p597_p0 }
  0x3c   : > { %607 = shalt.err (!%p604_p9)
}
  0x3d   : > { %493 = dma.hbm_to_vmem [thread:$0]  (!%p790_p10), %s973_s2, 128, %s794_s25, [#allocation6], %s712_s7, %s712_s7, %s713_s8  }
  0x3e   : > { %s844_s4 = sadd.s32 1, %s708_s15   ;;  %s27_s23 = sadd.s32 1, %s704_s14 }
  0x3f   : > { %s24_s5 = ssub.s32 %s708_s15, %s844_s4  ;;  %p34_p12 = scmp.ne.s32.totalorder %s704_s14, %s700_s13 }
  0x40   : > { %p25_p11 = scmp.eq.s32.totalorder %s24_s5, 0  ;;  %p35_p1 = scmp.eq.s32.totalorder %s708_s15, 0 }
  0x41   : > { %p982_p2 = scmp.eq.s32.totalorder %s763_s16, 7  ;;  %p504_p6 = scmp.lt.s32.totalorder %s708_s15, 8 }
  0x42   : > { %s860_s9 = scalar_select %p25_p11, %s704_s14, %s27_s23  }
  0x43   : > { %p854_p4 = por %p982_p2, %p34_p12  ;;  %p36_p8 = por %p35_p1, %p34_p12 }
  0x44   : > { %s158_s10 = sand.u32 1, %s704_s14   ;;  %s457_s25 = sshll.u32 %s708_s15, 8 }
  0x45   : > { %s440_s11 = sshll.u32 %s158_s10, 4  ;;  %s867_s17 = scalar_lea.hbm %s971_s0, %s457_s25 }
  0x46   : > { %s162_s21 = scalar_lea.vmem [#allocation2], %s440_s11  ;;  %p871_p10 = pnand %p504_p6, %p36_p8 }
  0x47   : > { %s169_s24 = sshll.u32 %s162_s21, 4  ;;  %s875_s27 = scalar_lea.sflag [#allocation3], %s158_s10  ;;  %s869_s24 = int_to_ptr.vmem [resolvable:$true] %s169_s24 }
  0x48   : > { %s608_s28 = scalar_lea.hbm %s867_s17, 256  ;;  %p610_p0 = pneg %p871_p10 }
  0x49   : > { %p609_p13 = scmp.ne.s32.totalorder %s867_s17, %s608_s28  ;;  %s613_s30 = scalar_lea.hbm %s971_s0, 2048 }
  0x4a   : > { %p614_p7 = scmp.lt.u32.totalorder %s867_s17, %s971_s0  ;;  %p615_p9 = scmp.lt.u32.totalorder %s613_s30, %s608_s28 }
  0x4b   : > { %p611_p3 = pnand %p610_p0, %p609_p13  ;;  %p617_p11 = scmp.lt.u32.totalorder %s608_s28, %s867_s17 }
  0x4c   : > { %p616_p12 = por %p615_p9, %p614_p7 }
  0x4d   : > { %p612_p5 = pneg %p611_p3 }
  0x4e   : > { %p618_p1 = por %p617_p11, %p616_p12 }
  0x50   : > { %p619_p2 = pnand %p618_p1, %p612_p5 }
  0x52   : > { %622 = shalt.err (!%p619_p2)
}
  0x53   : > { %s623_s10 = scalar_lea.vmem %s869_s24, 256  ;;  %s714_s11 = smov [#allocation2]  }
  0x54   : > { %p624_p6 = scmp.ne.s32.totalorder %s869_s24, %s623_s10  ;;  %s628_s25 = sshll.u32 %s714_s11, 4  ;;  %s629_s25 = int_to_ptr.vmem [resolvable:$false] %s628_s25 }
  0x55   : > { %s630_s7 = scalar_lea.vmem %s629_s25, 512  ;;  %p631_p3 = scmp.lt.s32.totalorder %s869_s24, %s629_s25 }
  0x56   : > { %p626_p8 = pnand %p624_p6, %p610_p0  ;;  %p632_p7 = scmp.lt.s32.totalorder %s630_s7, %s623_s10 }
  0x58   : > { %p627_p13 = pneg %p626_p8  ;;  %p633_p9 = por %p632_p7, %p631_p3 }
  0x5a   : > { %p634_p12 = pnand %p633_p9, %p627_p13 }
  0x5c   : > { %637 = shalt.err (!%p634_p12)
}
  0x5d   : > { %s715_s8 = smov 128   ;;  %s716_s21 = smov 8  }
  0x5e   : > { %497 = dma.hbm_to_vmem [thread:$0]  (!%p871_p10), %s867_s17, 256, %s869_s24, %s875_s27, %s715_s8, %s715_s8, %s716_s21  }
  0x5f   : > { %p985_p0 = scmp.ne.s32.totalorder %s980_s20, 0 }
  0x60   : > { %s906_s28 = sand.u32 (!%p985_p0), 1, %s700_s13   ;;  %p986_p5 = scmp.ne.s32.totalorder (!%p985_p0), %s978_s18, 0 }
  0x61   : > { %181 = sbr.rel (%p985_p0) target bundleno = 562 (0x232), region = 32  ;;  %s444_s22 = sshll.u32 (!%p985_p0), %s906_s28, 4 }
  0x62   : > { %s184_s29 = scalar_lea.sflag (!%p985_p0), [#allocation3], %s906_s28  ;;  %s187_s30 = scalar_lea.vmem (!%p985_p0), [#allocation2], %s444_s22 }
  0x68   : > { %683 = dma.done.wait (%p986_p5), %s184_s29, 256  }
  0x69   : > { %685 = vsyncadd (%p986_p5), %s184_s29, 4294967040  ;;  %p987_p11 = scmp.eq.s32.totalorder %s763_s16, 0 }
  0x6b   : > { %687 = dma.done.wait (%p987_p11), [#allocation6], 256   ;;  %p988_p10 = pmov %p987_p11 }
  0x6c   : > { %v717_v0 = vmov 0.0   ;;  %vm718_vm0 = vmmov 0   ;;  %v550_v1 = vld [vmem:[#allocation7] sm:$0xff]   ;;  %v223_v2 = vld [vmem:[%s187_s30] sm:$0xff]  ;;  %vm232_vm1 = vcmask 130048   ;;  %s217_s18 = scalar_lea.vmem [#allocation8], %s444_s22 }
  0x6d   : > { %689 = vsyncadd (%p988_p10), [#allocation6], 4294967040  ;;  %463 = vmatprep.subr.bf16.mxu0 %v717_v0  ;;  %465 = vmatprep.mubr.msk.bf16.mxu0 %vm718_vm0, %v717_v0  ;;  %v224_v3 = vld [vmem:[%s187_s30 + $0x8] sm:$0xff]  ;;  %v551_v10 = vld [vmem:[#allocation5] sm:$0xff]   ;;  %s343_s20 = sshll.u32 %s217_s18, 4  ;;  %s458_s17 = sshll.u32 %s763_s16, 8  ;;  %s921_s20 = int_to_ptr.vmem [resolvable:$true] %s343_s20 }
  0x6e   : > { %469 = vmatprep.subr.bf16.mxu1 %v717_v0  ;;  %471 = vmatprep.mubr.msk.bf16.mxu1 %vm718_vm0, %v717_v0  ;;  %v225_v4 = vpack.c.bf16 %v224_v3, %v223_v2  ;;  %s926_s27 = scalar_lea.hbm %s974_s3, %s458_s17  ;;  %s330_s23 = scalar_lea.sflag [#allocation4], %s906_s28 }
  0x6f   : > { %464 = vmatpush3.bf16.msra.mxu0 %v550_v1  ;;  %s638_s16 = scalar_lea.vmem %s921_s20, 256  ;;  %s719_s5 = smov [#allocation8]  }
  0x70   : > { %p639_p1 = scmp.ne.s32.totalorder %s921_s20, %s638_s16  ;;  %s642_s10 = sshll.u32 %s719_s5, 4  ;;  %s643_s10 = int_to_ptr.vmem [resolvable:$false] %s642_s10 }
  0x71   : > { %s644_s11 = scalar_lea.vmem %s643_s10, 512  ;;  %p645_p8 = scmp.lt.s32.totalorder %s921_s20, %s643_s10 }
  0x72   : > { %466 = vmatmul.mubr.msk.bf16.vlgmr.msra.gmra.mrb[0].mxu0 %vm232_vm1, %v225_v4  ;;  %p640_p2 = pnand %p639_p1, %p854_p4  ;;  %p646_p13 = scmp.lt.s32.totalorder %s644_s11, %s638_s16 }
  0x74   : > { %p641_p6 = pneg %p640_p2  ;;  %p647_p3 = por %p646_p13, %p645_p8 }
  0x76   : > { %p648_p7 = pnand %p647_p3, %p641_p6 }
 0x145   : > { %v270_v5 = vpop.f32.mrb[0].mxu0 }
 0x146   : > { %v467_v6 = vpop.f32.mrb[1].mxu0 }
 0x147   : > { %v273_v7 = vpop.f32.mrb[2].mxu0 }
 0x148   : > { %v277_v8 = vpack.c.bf16 %v273_v7, %v270_v5  ;;  %v468_v9 = vpop.f32.mrb[3].mxu0 }
 0x14a   : > { %470 = vmatpush3.bf16.msra.mxu1 %v277_v8 }
 0x14d   : > { %472 = vmatmul.mubr.msk.bf16.vlgmr.msra.gmra.mrb[0].mxu1 %vm232_vm1, %v551_v10 }
 0x220   : > { %v320_v11 = vpop.f32.mrb[0].mxu1 }
 0x221   : > { %327 = vst.msk [vmem:[%s217_s18] sm:$0xff] %vm232_vm1, %v320_v11  ;;  %v473_v12 = vpop.f32.mrb[1].mxu1 }
 0x222   : > { %v323_v13 = vpop.f32.mrb[2].mxu1 }
 0x223   : > { %328 = vst.msk [vmem:[%s217_s18 + $0x8] sm:$0xff] %vm232_vm1, %v323_v13  ;;  %v474_v14 = vpop.f32.mrb[3].mxu1 }
 0x224   : > { %651 = shalt.err (!%p648_p7)
}
 0x225   : > { %s652_s25 = scalar_lea.hbm %s926_s27, 256  ;;  %s656_s21 = scalar_lea.hbm %s974_s3, 2048 }
 0x226   : > { %p653_p9 = scmp.ne.s32.totalorder %s926_s27, %s652_s25  ;;  %p657_p5 = scmp.lt.u32.totalorder %s926_s27, %s974_s3 }
 0x227   : > { %p658_p11 = scmp.lt.u32.totalorder %s656_s21, %s652_s25  ;;  %p660_p1 = scmp.lt.u32.totalorder %s652_s25, %s926_s27 }
 0x228   : > { %p654_p12 = pnand %p653_p9, %p854_p4 }
 0x229   : > { %p659_p10 = por %p658_p11, %p657_p5 }
 0x22a   : > { %p655_p0 = pneg %p654_p12 }
 0x22b   : > { %p661_p2 = por %p660_p1, %p659_p10 }
 0x22d   : > { %p662_p6 = pnand %p661_p2, %p655_p0 }
 0x22f   : > { %665 = shalt.err (!%p662_p6)
}
 0x230   : > { %s720_s30 = smov 128   ;;  %s721_s18 = smov 8  }
 0x231   : > { %485 = dma.vmem_to_hbm [thread:$0]  (%p854_p4), %s921_s20, 256, %s926_s27, %s330_s23, %s720_s30, %s720_s30, %s721_s18  }
 0x232 PF: > { %p507_p8 = scmp.ge.s32.totalorder %s708_s15, 2  ;;  %s358_s17 = sand.u32 1, %s696_s12  }
 0x233   : > { %p989_p13 = scmp.ne.s32.totalorder %s979_s19, 0  ;;  %s359_s24 = scalar_lea.sflag [#allocation4], %s358_s17 }
 0x235   : > { %p499_p3 = pnand %p507_p8, %p989_p13 }
 0x237   : > { %691 = dma.done.wait (!%p499_p3), %s359_s24, 256  }
 0x238   : > { %693 = vsyncadd (!%p499_p3), %s359_s24, 4294967040  ;;  %p17_p7 = scmp.ge.s32.totalorder %s844_s4, 10   ;;  %s990_s12 = smov %s700_s13 }
 0x239   : > { %s991_s13 = smov %s704_s14  ;;  %s992_s14 = smov %s860_s9 }
 0x23a   : > { %s993_s15 = smov %s844_s4  ;;  %19 = sbr.rel (!%p17_p7) target bundleno = 6 (0x6), region = 85 }
 0x241   :  { %364 = vsyncpa [#allocation3], 1 }
 0x242   :  { %366 = vsyncpa [#allocation3 + $0x1], 1 }
 0x243   :  { %367 = vsyncpa [#allocation6], 1 }
 0x244   :  { %368 = vsyncpa [#allocation4], 1 }
 0x245   :  { %370 = vsyncpa [#allocation4 + $0x1], 1 }

</bundles_post_ra>
